<compile_context>
chip_gen: v7x
topology: tpu7x:2x2x1
jax: 0.10.0
libtpu: 0.0.40
codegen_flags: <defaults>
</compile_context>

<pallas_src>
import functools

import jax
import jax.numpy as jnp
from jax.experimental import pallas as pl
from jax.experimental.pallas import tpu as pltpu

LANE = 128
SUBLANE = 8
BLOCK_ROWS = 2048  # rows per block for the tiled (large-input) path


def _scale_kernel(scale_ref, x_ref, o_ref):
    # Elementwise multiply by the runtime scalar held in SMEM (VPU only).
    s = scale_ref[0]
    o_ref[...] = (x_ref[...].astype(jnp.float32) * s).astype(o_ref.dtype)


def _scale_2d(x2d, scale_arr):
    rows = x2d.shape[0]
    if rows <= BLOCK_ROWS:
        # Single kernel step: whole array is one VMEM-resident block.
        grid = (1,)
        block_rows = rows
    else:
        grid = (pl.cdiv(rows, BLOCK_ROWS),)
        block_rows = BLOCK_ROWS

    return pl.pallas_call(
        _scale_kernel,
        out_shape=jax.ShapeDtypeStruct(x2d.shape, x2d.dtype),
        grid_spec=pltpu.PrefetchScalarGridSpec(
            num_scalar_prefetch=1,  # scale lands in SMEM before the grid runs
            grid=grid,
            in_specs=[pl.BlockSpec((block_rows, LANE), lambda i, s: (i, 0))],
            out_specs=pl.BlockSpec((block_rows, LANE), lambda i, s: (i, 0)),
        ),
        compiler_params=pltpu.CompilerParams(
            # Elementwise => blocks independent; lets v7x split across 2 TCs.
            dimension_semantics=("parallel",),
        ),
    )(scale_arr, x2d)


@functools.partial(jax.jit, static_argnames=("module_fn",))
def scale_forward(x, scale, module_fn=None):
    """Pallas equivalent of Scale.forward: module(x) * scale."""
    # TODO(synk): the wrapped nn.Module is arbitrary; only the `* scale`
    # elementwise multiply is implemented as a Pallas kernel. The submodule
    # (if any) is applied here as a plain JAX callable.
    y = x if module_fn is None else module_fn(x)

    scale_arr = jnp.asarray(scale, dtype=jnp.float32).reshape(1)

    total = y.size
    chunk = SUBLANE * LANE
    if total % chunk == 0:
        # No padding copy needed (true for 2*4*16*16 = 2048 = 16 * 128).
        y2d = y.reshape(total // LANE, LANE)
        out2d = _scale_2d(y2d, scale_arr)
        return out2d.reshape(y.shape)

    # Ragged fallback: pad up to whole (8,128) tiles, slice back afterwards.
    padded = ((total + chunk - 1) // chunk) * chunk
    flat = jnp.pad(y.reshape(-1), (0, padded - total))
    out2d = _scale_2d(flat.reshape(padded // LANE, LANE), scale_arr)
    return out2d.reshape(-1)[:total].reshape(y.shape)


if __name__ == "__main__":
    key = jax.random.PRNGKey(0)

    # Small shape consistent with a conv feature map (NCHW): batch=2,
    # channels=4, 16x16 spatial.
    shape = (2, 4, 16, 16)
    x = jax.random.normal(key, shape, dtype=jnp.float32)
    scale = jnp.float32(0.5)  # the registered 'scale' buffer value

    out = scale_forward(x, scale)
    jax.block_until_ready(out)

    # Pure-JAX reference check (identity submodule).
    ref = x * scale
    assert out.shape == x.shape
    assert jnp.allclose(out, ref, rtol=1e-6, atol=1e-6), (out, ref)

    print("KERNEL_OK")
</pallas_src>

<mosaic_0001>
module attributes {stable_mosaic.version = 11 : i64} {
  func.func @_scale_kernel(%arg0: i32, %arg1: memref<1xf32, #tpu.memory_space<smem>>, %arg2: memref<16x128xf32, #tpu.memory_space<vmem>>, %arg3: memref<16x128xf32, #tpu.memory_space<vmem>>) attributes {dimension_semantics = [#tpu.dimension_semantics<parallel>], iteration_bounds = array<i64: 1>, scalar_prefetch = 1 : i64, scratch_operands = 0 : i64, tpu.core_type = #tpu.core_type<tc>, window_params = [{transform_indices = @transform_0, window_bounds = array<i64: 16, 128>}, {transform_indices = @transform_1, window_bounds = array<i64: 16, 128>}]} {
    %c0 = arith.constant 0 : index
    %0 = memref.load %arg1[%c0] : memref<1xf32, #tpu.memory_space<smem>>
    %c0_0 = arith.constant 0 : index
    %c0_1 = arith.constant 0 : index
    %1 = vector.load %arg2[%c0_0, %c0_1] : memref<16x128xf32, #tpu.memory_space<vmem>>, vector<16x128xf32>
    %2 = vector.broadcast %0 : f32 to vector<16x128xf32>
    %3 = arith.mulf %1, %2 : vector<16x128xf32>
    %c0_2 = arith.constant 0 : index
    %c0_3 = arith.constant 0 : index
    %4 = vector.load %arg3[%c0_2, %c0_3] : memref<16x128xf32, #tpu.memory_space<vmem>>, vector<16x128xf32>
    tpu.vector_store %arg3[%c0_2, %c0_3], %3 {strides = array<i32>} : memref<16x128xf32, #tpu.memory_space<vmem>>, vector<16x128xf32>,
    return
  }
  func.func @transform_0(%arg0: i32, %arg1: memref<1xf32, #tpu.memory_space<smem>>) -> (i32, i32) {
    %c0_i32 = arith.constant 0 : i32
    %c0_i32_0 = arith.constant 0 : i32
    return %arg0, %c0_i32 : i32, i32
  }
  func.func @transform_1(%arg0: i32, %arg1: memref<1xf32, #tpu.memory_space<smem>>) -> (i32, i32) {
    %c0_i32 = arith.constant 0 : i32
    %c0_i32_0 = arith.constant 0 : i32
    return %arg0, %c0_i32 : i32, i32
  }
}

</mosaic_0001>

<bundles_post_ra>
// kernel: scale_forward.1
= control target key start
LH: loop header
LB: loop body
LE: loop exit
PB: predicated region body
PF: predicated region fallthrough
CT: control target
= control target key end

     0   :  { %s52_s0 = inlined_call_operand.<no memory space> [shape: f32[1], index: 0, kind: input, shape index: {}]   ;;  %s53_s1 = inlined_call_operand.vmem [shape: f32[16,128], index: 1, kind: input, shape index: {}]   ;;  %s54_s2 = inlined_call_operand.vmem [shape: f32[16,128], index: 2, kind: output, shape index: {}]  }
   0x1   :  { %v11_v0 = vld [vmem:[%s53_s1] sm:$0xff]  ;;  %v13_v1 = vstv %s52_s0  ;;  %v12_v2 = vld [vmem:[%s53_s1 + $0x8] sm:$0xff] }
   0x2   :  { %v14_v3 = vmul.f32 %v13_v1, %v11_v0  ;;  %v15_v4 = vmul.f32 %v13_v1, %v12_v2 }
   0x4   :  { %16 = vst [vmem:[%s54_s2] sm:$0xff] %v14_v3  ;;  %17 = vst [vmem:[%s54_s2 + $0x8] sm:$0xff] %v15_v4 }

</bundles_post_ra>
